<compile_context>
chip_gen: v5e
topology: v5e:2x2
jax: 0.10.0
libtpu: 0.0.40
codegen_flags: <defaults>
</compile_context>

<pallas_src>
import jax
import jax.numpy as jnp
from jax.experimental import pallas as pl
from jax.experimental.pallas import tpu as pltpu


def _linear_kernel(x_ref, w_ref, b_ref, o_ref):
    # (tb, K) @ (K, r) on the MXU; the binding resource is the x DMA stream,
    # not FLOPs, so the tiny matmul is fine.
    acc = jnp.dot(x_ref[...], w_ref[...], preferred_element_type=jnp.float32)
    o_ref[...] = (acc + b_ref[...].astype(jnp.float32)).astype(o_ref.dtype)


def _choose_block_rows(rows, in_cols, out_cols, dtype_bytes,
                       target_rows=8192,
                       vmem_budget_bytes=12 * 1024 * 1024):
    """Pick the batch-tile row count.

    VMEM accounting is lane-padding aware: a (tb, C) block occupies
    tb * round_up(C, 128) * dtype_bytes per buffer, and both the x tile and
    the out tile are double-buffered by the auto-pipeliner, so the footprint
    is 2 * (x_tile_padded + out_tile_padded).  The 12 MiB default budget keeps
    that under the smallest scoped-VMEM default (v5e: 16 MiB) with headroom
    for the resident weight/bias buffers and pipeline bookkeeping, and well
    inside v7x's 32 MiB scoped / 64 MiB physical VMEM.
    """
    def _lane_padded(c):
        return ((c + 127) // 128) * 128

    per_row = 2 * (_lane_padded(in_cols) + _lane_padded(out_cols)) * dtype_bytes
    max_rows = max(8, vmem_budget_bytes // per_row)
    tb = min(target_rows, max_rows, rows)
    if tb < rows:
        tb = max(8, (tb // 8) * 8)   # sublane alignment when actually tiling
    return tb


def linear_regression_forward(x, weight, bias, *, target_rows=8192,
                              vmem_budget_bytes=12 * 1024 * 1024):
    """x: (B, F); weight: (1, F) (torch layout); bias: (1,) -> (B, 1)."""
    B, F = x.shape
    dtype = x.dtype
    dtype_bytes = jnp.dtype(dtype).itemsize
    w = weight.reshape(F).astype(dtype)

    # Lane-packing factor: fold r consecutive batch rows into one 128-lane row.
    rpk = 128 // F if (F < 128 and 128 % F == 0) else 1

    if rpk > 1:
        pad = (-B) % rpk
        x_in = jnp.pad(x, ((0, pad), (0, 0))) if pad else x
        rows = (B + pad) // rpk
        x_in = x_in.reshape(rows, F * rpk)           # pure row-major relayout
        # Block-diagonal weight: w_mat[j*F + f, j] = w[f], zeros elsewhere.
        eye = jnp.eye(rpk, dtype=dtype)
        w_mat = jnp.einsum("f,jk->jfk", w, eye).reshape(F * rpk, rpk)
        b_mat = jnp.broadcast_to(bias.reshape(1, 1).astype(dtype), (1, rpk))
    else:
        x_in = x
        rows = B
        w_mat = w.reshape(F, 1)
        b_mat = bias.reshape(1, 1).astype(dtype)

    in_cols = x_in.shape[1]
    out_cols = w_mat.shape[1]

    tb = _choose_block_rows(rows, in_cols, out_cols, dtype_bytes,
                            target_rows=target_rows,
                            vmem_budget_bytes=vmem_budget_bytes)
    grid = (pl.cdiv(rows, tb),)

    cost = pl.CostEstimate(
        flops=2 * rows * in_cols * out_cols,
        transcendentals=0,
        bytes_accessed=(rows * in_cols + in_cols * out_cols + out_cols
                        + rows * out_cols) * dtype_bytes,
    )

    out = pl.pallas_call(
        _linear_kernel,
        out_shape=jax.ShapeDtypeStruct((rows, out_cols), dtype),
        grid_spec=pltpu.PrefetchScalarGridSpec(
            num_scalar_prefetch=0,
            grid=grid,
            in_specs=[
                # x streams through VMEM, one large lane-dense tile per step.
                pl.BlockSpec((tb, in_cols), lambda i: (i, 0)),
                # Weight and bias: constant index_map -> VMEM-resident.
                pl.BlockSpec((in_cols, out_cols), lambda i: (0, 0)),
                pl.BlockSpec((1, out_cols), lambda i: (0, 0)),
            ],
            out_specs=pl.BlockSpec((tb, out_cols), lambda i: (i, 0)),
        ),
        compiler_params=pltpu.CompilerParams(
            # Batch axis is independent.  On v7x, switch to
            # pltpu.CORE_PARALLEL if xprof shows only one TensorCore busy.
            dimension_semantics=("parallel",),
        ),
        cost_estimate=cost,
    )(x_in, w_mat, b_mat)

    if rpk > 1:
        out = out.reshape(rows * rpk, 1)[:B]
    return out


if __name__ == "__main__":
    key = jax.random.PRNGKey(0)
    kx, kw, kb, kx2, kx3, kw2, kb2, kx4 = jax.random.split(key, 8)

    num_features = 32

    # Parameters with nn.Linear(num_features, 1) shapes (torch layout).
    weight = jax.random.normal(kw, (1, num_features), dtype=jnp.float32) * 0.1
    bias = jax.random.normal(kb, (1,), dtype=jnp.float32) * 0.1

    def ref_fn(xv, wv, bv):
        # Full-precision reference (avoid XLA's default low-precision matmul).
        return jnp.dot(xv, wv.T, precision=jax.lax.Precision.HIGHEST) + bv

    # Test 1: small batch, lane-packed single-block path (8 rows -> 2 packed).
    x1 = jax.random.normal(kx, (8, num_features), dtype=jnp.float32)
    y1 = jax.block_until_ready(linear_regression_forward(x1, weight, bias))
    assert y1.shape == (8, 1)
    assert jnp.allclose(y1, ref_fn(x1, weight, bias), atol=1e-4, rtol=1e-4)

    # Test 2: batch not a multiple of the packing factor (row padding path).
    x2 = jax.random.normal(kx2, (10, num_features), dtype=jnp.float32)
    y2 = jax.block_until_ready(linear_regression_forward(x2, weight, bias))
    assert y2.shape == (10, 1)
    assert jnp.allclose(y2, ref_fn(x2, weight, bias), atol=1e-4, rtol=1e-4)

    # Test 3: force the multi-tile pipelined path with a partial last block
    # (1000 rows -> 250 packed rows, tb=64 -> grid of 4, last block = 58 rows).
    x3 = jax.random.normal(kx3, (1000, num_features), dtype=jnp.float32)
    y3 = jax.block_until_ready(
        linear_regression_forward(x3, weight, bias, target_rows=64))
    assert y3.shape == (1000, 1)
    assert jnp.allclose(y3, ref_fn(x3, weight, bias), atol=1e-4, rtol=1e-4)

    # Test 4: feature count that does not divide 128 -> unpacked fallback path.
    f2 = 20
    weight2 = jax.random.normal(kw2, (1, f2), dtype=jnp.float32) * 0.1
    bias2 = jax.random.normal(kb2, (1,), dtype=jnp.float32) * 0.1
    x4 = jax.random.normal(kx4, (16, f2), dtype=jnp.float32)
    y4 = jax.block_until_ready(linear_regression_forward(x4, weight2, bias2))
    assert y4.shape == (16, 1)
    assert jnp.allclose(y4, ref_fn(x4, weight2, bias2), atol=1e-4, rtol=1e-4)

    print("KERNEL_OK")
</pallas_src>

<mosaic_0001>
module attributes {stable_mosaic.version = 11 : i64} {
  func.func @_linear_kernel(%arg0: i32, %arg1: memref<2x128xf32, #tpu.memory_space<vmem>>, %arg2: memref<128x4xf32, #tpu.memory_space<vmem>>, %arg3: memref<1x4xf32, #tpu.memory_space<vmem>>, %arg4: memref<2x4xf32, #tpu.memory_space<vmem>>) attributes {dimension_semantics = [#tpu.dimension_semantics<parallel>], iteration_bounds = array<i64: 1>, scalar_prefetch = 0 : i64, scratch_operands = 0 : i64, tpu.core_type = #tpu.core_type<tc>, window_params = [{transform_indices = @transform_0, window_bounds = array<i64: 2, 128>}, {pipeline_mode = #tpu.pipeline_mode<synchronous>, transform_indices = @transform_1, window_bounds = array<i64: 128, 4>}, {pipeline_mode = #tpu.pipeline_mode<synchronous>, transform_indices = @transform_2, window_bounds = array<i64: 1, 4>}, {transform_indices = @transform_3, window_bounds = array<i64: 2, 4>}]} {
    %c0 = arith.constant 0 : index
    %c0_0 = arith.constant 0 : index
    %0 = vector.load %arg1[%c0, %c0_0] : memref<2x128xf32, #tpu.memory_space<vmem>>, vector<2x128xf32>
    %c0_1 = arith.constant 0 : index
    %c0_2 = arith.constant 0 : index
    %1 = vector.load %arg2[%c0_1, %c0_2] : memref<128x4xf32, #tpu.memory_space<vmem>>, vector<128x4xf32>
    %cst = arith.constant dense<0.000000e+00> : vector<2x4xf32>
    %2 = tpu.matmul %0, %1, %cst {dimension_numbers = #tpu.dot_dimension_numbers<[1], [0], [0], [1], [0, 0, 1, 1], [], []>} : vector<2x128xf32>, vector<128x4xf32>, vector<2x4xf32> -> vector<2x4xf32>
    %c0_3 = arith.constant 0 : index
    %c0_4 = arith.constant 0 : index
    %3 = vector.load %arg3[%c0_3, %c0_4] : memref<1x4xf32, #tpu.memory_space<vmem>>, vector<1x4xf32>
    %4 = vector.broadcast %3 : vector<1x4xf32> to vector<2x4xf32>
    %5 = arith.addf %2, %4 : vector<2x4xf32>
    %c0_5 = arith.constant 0 : index
    %c0_6 = arith.constant 0 : index
    %6 = vector.load %arg4[%c0_5, %c0_6] : memref<2x4xf32, #tpu.memory_space<vmem>>, vector<2x4xf32>
    tpu.vector_store %arg4[%c0_5, %c0_6], %5 {strides = array<i32>} : memref<2x4xf32, #tpu.memory_space<vmem>>, vector<2x4xf32>,
    return
  }
  func.func @transform_0(%arg0: i32) -> (i32, i32) {
    %c0_i32 = arith.constant 0 : i32
    %c0_i32_0 = arith.constant 0 : i32
    return %arg0, %c0_i32 : i32, i32
  }
  func.func @transform_1(%arg0: i32) -> (i32, i32) {
    %c0_i32 = arith.constant 0 : i32
    %c0_i32_0 = arith.constant 0 : i32
    %c0_i32_1 = arith.constant 0 : i32
    return %c0_i32, %c0_i32_0 : i32, i32
  }
  func.func @transform_2(%arg0: i32) -> (i32, i32) {
    %c0_i32 = arith.constant 0 : i32
    %c0_i32_0 = arith.constant 0 : i32
    %c0_i32_1 = arith.constant 0 : i32
    return %c0_i32, %c0_i32_0 : i32, i32
  }
  func.func @transform_3(%arg0: i32) -> (i32, i32) {
    %c0_i32 = arith.constant 0 : i32
    %c0_i32_0 = arith.constant 0 : i32
    return %arg0, %c0_i32 : i32, i32
  }
}

</mosaic_0001>

<bundles_post_ra>
// kernel: tpu_custom_call.1
= control target key start
LH: loop header
LB: loop body
LE: loop exit
PB: predicated region body
PF: predicated region fallthrough
CT: control target
= control target key end

     0   :  { %s180_s0 = inlined_call_operand.vmem [shape: f32[2,128], index: 0, kind: input, shape index: {}]   ;;  %s181_s1 = inlined_call_operand.vmem [shape: f32[128,4], index: 1, kind: input, shape index: {}]   ;;  %s182_s2 = inlined_call_operand.vmem [shape: f32[1,4], index: 2, kind: input, shape index: {}]   ;;  %s183_s3 = inlined_call_operand.hbm [shape: f32[2,4], index: 3, kind: output, shape index: {}]  }
   0x1   :  { %v31_v0 = vld [vmem:[%s181_s1 + $0x78] sm:$0xff]  ;;  %v30_v1 = vld [vmem:[%s181_s1 + $0x70] sm:$0xff]  ;;  %v29_v2 = vld [vmem:[%s181_s1 + $0x68] sm:$0xff] }
   0x2   :  { %36 = vmatpush.msra.mxu0 %v31_v0  ;;  %v28_v3 = vld [vmem:[%s181_s1 + $0x60] sm:$0xff]  ;;  %v27_v4 = vld [vmem:[%s181_s1 + $0x58] sm:$0xff] }
   0x4   :  { %37 = vmatpush.msra.mxu0 %v30_v1 }
   0x6   :  { %38 = vmatpush.msra.mxu0 %v29_v2 }
   0x7   :  { %8 = vsyncpa [#allocation3], 0  ;;  %v26_v5 = vld [vmem:[%s181_s1 + $0x50] sm:$0xff]  ;;  %v25_v6 = vld [vmem:[%s181_s1 + $0x48] sm:$0xff]  ;;  %s102_s21 = smov [#allocation2]   ;;  %s65_s25 = sshll.u32 %s183_s3, 4  ;;  %s66_s25 = int_to_ptr.hbm [resolvable:$true] %s65_s25 }
   0x8   :  { %39 = vmatpush.msra.mxu0 %v28_v3  ;;  %v24_v7 = vld [vmem:[%s181_s1 + $0x40] sm:$0xff]  ;;  %v23_v8 = vld [vmem:[%s181_s1 + $0x38] sm:$0xff]  ;;  %v22_v9 = vld [vmem:[%s181_s1 + $0x30] sm:$0xff]  ;;  %s63_s22 = sshll.u32 %s102_s21, 4  ;;  %vm56_vm0 = vcmask 25600   ;;  %s64_s22 = int_to_ptr.vmem [resolvable:$true] %s63_s22 }
   0x9   :  { %v21_v10 = vld [vmem:[%s181_s1 + $0x28] sm:$0xff]  ;;  %v20_v11 = vld [vmem:[%s181_s1 + $0x20] sm:$0xff]  ;;  %v19_v12 = vld [vmem:[%s181_s1 + $0x18] sm:$0xff] }
   0xa   :  { %40 = vmatpush.msra.mxu0 %v27_v4  ;;  %v18_v13 = vld [vmem:[%s181_s1 + $0x10] sm:$0xff]  ;;  %v17_v14 = vld [vmem:[%s181_s1 + $0x8] sm:$0xff]  ;;  %v16_v15 = vld [vmem:[%s181_s1] sm:$0xff] }
   0xb   :  { %v15_v16 = vld [vmem:[%s180_s0] sm:$0x3] }
   0xc   :  { %41 = vmatpush.msra.mxu0 %v26_v5  ;;  %v75_v17 = vld [vmem:[%s182_s2] ss:$0 sm:$0xff] }
   0xe   :  { %42 = vmatpush.msra.mxu0 %v25_v6 }
  0x10   :  { %43 = vmatpush.msra.mxu0 %v24_v7 }
  0x12   :  { %44 = vmatpush.msra.mxu0 %v23_v8 }
  0x14   :  { %45 = vmatpush.msra.mxu0 %v22_v9 }
  0x16   :  { %46 = vmatpush.msra.mxu0 %v21_v10 }
  0x18   :  { %47 = vmatpush.msra.mxu0 %v20_v11 }
  0x1a   :  { %48 = vmatpush.msra.mxu0 %v19_v12 }
  0x1c   :  { %49 = vmatpush.msra.mxu0 %v18_v13 }
  0x1e   :  { %50 = vmatpush.msra.mxu0 %v17_v14 }
  0x20   :  { %51 = vmatpush.msra.mxu0 %v16_v15 }
  0x21   :  { %52 = vmatmul.f32.vlgmr.msra.gmra.mxu0 %v15_v16 }
  0x9e   :  { %v53_v18 = vpop.f32.mrf.mxu0 }
  0x9f   :  { %v54_v19 = vadd.f32 %v75_v17, %v53_v18 }
  0xa1   :  { %57 = vst.msk [vmem:[#allocation2] sm:$0x3] %vm56_vm0, %v54_v19 }
  0xa2   :  { %68 = dma.vmem_to_hbm [thread:$0]  %s64_s22, 32, %s66_s25, [#allocation3]  }
  0xa3   :  { %100 = dma.done.wait [#allocation3], 32  }
  0xa4   :  { %101 = vsyncadd [#allocation3], 4294967264 }
  0xa5   :  { %73 = vsyncpa [#allocation3], 1 }

</bundles_post_ra>
